<compile_context>
chip_gen: v6e
topology: v6e:2x2x1
jax: 0.10.0
libtpu: 0.0.40
codegen_flags: <defaults>
</compile_context>

<pallas_src>
import numpy as np
import jax
import jax.numpy as jnp
from jax import lax
from jax.experimental import pallas as pl
from jax.experimental.pallas import tpu as pltpu


# ----------------------------- kernel ---------------------------------------

def _make_resblock_kernel(H, W, Cin, Cout, bt, has_shortcut, mm_dtype):
    WCi = W * Cin                      # lane width of every conv-input slab
    BH = bt * H                        # rows (matmul M) per grid step
    Kc = 3 * WCi                       # K of one 3x3 conv (3 stacked bands)
    K2 = Kc + (WCi if has_shortcut else 0)   # conv2 K (+ folded 1x1 shortcut)

    def kernel(x_ref, s1_ref, t1_ref, T1_ref, b1_ref, T2_ref, b2_ref,
               o_ref, hpad_ref, im_ref):
        x = x_ref[...]                                     # (BH, W*Cin) f32

        # Per-image vertical-boundary masks: row h-1 / h+1 does not exist for
        # the first / last row of each image inside the stacked slab.
        hrow = lax.broadcasted_iota(jnp.int32, (BH, WCi), 0) % H
        is_top = hrow == 0
        is_bot = hrow == (H - 1)

        # The only two staging-halo rows the band reads can touch (they are
        # masked out anyway; zeroing them is two 1-row stores per step).
        zrow = jnp.zeros((1, WCi), jnp.float32)
        hpad_ref[7:8, :] = zrow
        hpad_ref[8 + BH:9 + BH, :] = zrow

        if has_shortcut:
            # Raw x feeds the (BN + 1x1 conv) shortcut folded into conv2's K;
            # written once per step, untouched by the band stores below.
            im_ref[:, Kc:Kc + WCi] = x

        def conv3x3(h, T_ref, b_ref, k):
            # Stage rows with an 8-row top pad so the interior store stays
            # sublane-aligned, build the (BH, k) im2col LHS with three
            # lane-offset stores, then issue ONE MXU dot (f32 accumulate).
            hpad_ref[8:8 + BH, :] = h
            down = jnp.where(is_top, 0.0, hpad_ref[7:7 + BH, :])   # row h-1
            up = jnp.where(is_bot, 0.0, hpad_ref[9:9 + BH, :])     # row h+1
            im_ref[:, 0:WCi] = down
            im_ref[:, WCi:2 * WCi] = h
            im_ref[:, 2 * WCi:3 * WCi] = up
            lhs = im_ref[:, 0:k].astype(mm_dtype)
            return jnp.dot(lhs, T_ref[...],
                           preferred_element_type=jnp.float32) + b_ref[...]

        # BN1 -> ReLU (f32 VPU on the lane-packed slab)
        h1 = jnp.maximum(x * s1_ref[...] + t1_ref[...], 0.0)
        # conv1 (3x3, no bias) with BN2 folded into T1/b1, then ReLU
        h2 = jnp.maximum(conv3x3(h1, T1_ref, b1_ref, Kc), 0.0)
        # conv2 (3x3, +bias), with the folded 1x1 shortcut stacked onto its K
        y = conv3x3(h2, T2_ref, b2_ref, K2)
        if not has_shortcut:
            y = y + x                            # identity shortcut on the VPU
        o_ref[...] = y.astype(o_ref.dtype)       # lane-dense store

    return kernel


# --------------------------- weight packing ---------------------------------

def _band_toeplitz(w_hwio, W):
    """(3,3,Ci,Co) HWIO conv weight -> (3*W*Ci, W*Co) K-stacked band matrix so
    that conv3x3_same(x)[h] == concat(x[h-1], x[h], x[h+1]) @ T, where each
    x[row] is the (W*Ci,) lane-packed row slab and out-of-range rows are zero.
    Horizontal SAME padding is realized by truncating the band at the edges."""
    KH, KW, Ci, Co = w_hwio.shape
    w = np.asarray(w_hwio, np.float32)
    T = np.zeros((KH, W * Ci, W * Co), np.float32)
    for r in range(KH):
        for wo in range(W):
            for s in range(KW):
                wi = wo + s - 1
                if 0 <= wi < W:
                    T[r, wi * Ci:(wi + 1) * Ci, wo * Co:(wo + 1) * Co] = w[r, s]
    return jnp.asarray(T.reshape(KH * W * Ci, W * Co))


def _block_diag(m, W):
    """(Ci,Co) 1x1-conv weight -> (W*Ci, W*Co) block-diagonal matrix acting on
    a lane-packed row slab."""
    Ci, Co = m.shape
    mm = np.asarray(m, np.float32)
    S = np.zeros((W * Ci, W * Co), np.float32)
    for w in range(W):
        S[w * Ci:(w + 1) * Ci, w * Co:(w + 1) * Co] = mm
    return jnp.asarray(S)


# ------------------------------ wrapper --------------------------------------

def resblock_pallas(x_nchw, params, *, block_n=8, mm_dtype=jnp.bfloat16):
    N, Cin, H, W = x_nchw.shape
    Cout = params["w2"].shape[-1]
    has_shortcut = Cin != Cout
    WCi, WCo = W * Cin, W * Cout

    # Batch tile: stack `bt` images along the matmul M axis (M = bt*H).
    # block_n=8 targets M=128 (v5e MXU height); use block_n=16 on v6e/v7x.
    bt = int(max(1, min(block_n, N)))
    Np = ((N + bt - 1) // bt) * bt

    # NCHW -> row-slab (N*H, W*Cin): channels folded into the lane axis.
    x2d = jnp.transpose(x_nchw, (0, 2, 3, 1)).reshape(N * H, WCi)
    if Np != N:
        x2d = jnp.concatenate(
            [x2d, jnp.zeros(((Np - N) * H, WCi), x2d.dtype)], axis=0)

    tile = lambda v, C: jnp.tile(jnp.asarray(v, jnp.float32).reshape(-1),
                                 W).reshape(1, W * C)

    # BN1 stays in-kernel; BN2 folded into conv1; shortcut BN folded into the
    # 1x1 conv; the 1x1 shortcut itself folded into conv2's K block.
    # Weights are cast to mm_dtype ONCE here (not per grid step).
    s1r, t1r = tile(params["s1"], Cin), tile(params["t1"], Cin)
    w1f = params["w1"] * params["s2"].reshape(1, 1, 1, Cin)
    T1 = _band_toeplitz(w1f, W).astype(mm_dtype)           # (3*WCi, W*Cin)
    b1r = tile(params["t2"], Cin)
    T2 = _band_toeplitz(params["w2"], W)                    # (3*WCi, W*Cout)
    if has_shortcut:
        wscf = params["ss"].reshape(Cin, 1) * params["wsc"]
        bscf = (params["ts"].reshape(1, Cin) @ params["wsc"]
                + params["bsc"].reshape(1, Cout))
        T2f = jnp.concatenate([T2, _block_diag(wscf, W)],
                              axis=0).astype(mm_dtype)      # (4*WCi, W*Cout)
        b2r = tile(params["b2"], Cout) + tile(bscf, Cout)
    else:
        T2f = T2.astype(mm_dtype)
        b2r = tile(params["b2"], Cout)
    K2 = T2f.shape[0]

    kernel = _make_resblock_kernel(H, W, Cin, Cout, bt, has_shortcut, mm_dtype)
    cst = lambda *shape: pl.BlockSpec(shape, lambda n: (0, 0))
    BH = bt * H

    out2d = pl.pallas_call(
        kernel,
        out_shape=jax.ShapeDtypeStruct((Np * H, WCo), jnp.float32),
        grid=(Np // bt,),
        in_specs=[
            pl.BlockSpec((BH, WCi), lambda n: (n, 0)),      # x (bt images)
            cst(1, WCi), cst(1, WCi),                       # BN1 scale / shift
            cst(3 * WCi, WCi), cst(1, WCi),                 # conv1 (K-stacked)
            cst(K2, WCo), cst(1, WCo),                      # conv2 (+shortcut)
        ],
        out_specs=pl.BlockSpec((BH, WCo), lambda n: (n, 0)),
        scratch_shapes=[
            pltpu.VMEM((BH + 16, WCi), jnp.float32),        # staged rows
            pltpu.VMEM((BH, K2), jnp.float32),              # im2col MXU LHS
        ],
        compiler_params=pltpu.CompilerParams(
            dimension_semantics=("parallel",)),
    )(x2d, s1r, t1r, T1, b1r, T2f, b2r)

    # row-slab -> NCHW (PyTorch convention); keep row-slab between stacked
    # ResBlocks in a real network to avoid paying this transpose every call.
    out = out2d.reshape(Np, H, W, Cout)[:N]
    return jnp.transpose(out, (0, 3, 1, 2))


# ---------------------------- params & reference ----------------------------

def _bn_affine(key, c, eps=1e-5):
    k1, k2, k3, k4 = jax.random.split(key, 4)
    gamma = jax.random.uniform(k1, (c,), jnp.float32, 0.8, 1.2)
    beta = 0.1 * jax.random.normal(k2, (c,), jnp.float32)
    mean = 0.1 * jax.random.normal(k3, (c,), jnp.float32)
    var = jax.random.uniform(k4, (c,), jnp.float32, 0.5, 1.5)
    scale = gamma * lax.rsqrt(var + eps)
    shift = beta - mean * scale
    return scale.reshape(1, c), shift.reshape(1, c)


def make_params(key, cin, cout):
    ks = jax.random.split(key, 8)
    s1, t1 = _bn_affine(ks[0], cin)
    s2, t2 = _bn_affine(ks[1], cin)
    w1 = 0.1 * jax.random.normal(ks[2], (3, 3, cin, cin), jnp.float32)
    w2 = 0.1 * jax.random.normal(ks[3], (3, 3, cin, cout), jnp.float32)
    b2 = 0.1 * jax.random.normal(ks[4], (1, cout), jnp.float32)
    p = dict(s1=s1, t1=t1, w1=w1, s2=s2, t2=t2, w2=w2, b2=b2)
    if cin != cout:
        p["ss"], p["ts"] = _bn_affine(ks[5], cin)
        p["wsc"] = 0.1 * jax.random.normal(ks[6], (cin, cout), jnp.float32)
        p["bsc"] = 0.1 * jax.random.normal(ks[7], (1, cout), jnp.float32)
    return p


def resblock_reference(x_nchw, p):
    x = jnp.transpose(x_nchw, (0, 2, 3, 1))
    conv = lambda v, w: lax.conv_general_dilated(
        v, w, window_strides=(1, 1), padding="SAME",
        dimension_numbers=("NHWC", "HWIO", "NHWC"))
    h = jnp.maximum(x * p["s1"] + p["t1"], 0.0)
    h2 = jnp.maximum(conv(h, p["w1"]) * p["s2"] + p["t2"], 0.0)
    y2 = conv(h2, p["w2"]) + p["b2"]
    if "wsc" in p:
        s = x * p["ss"] + p["ts"]
        sc = jnp.einsum("nhwc,cd->nhwd", s, p["wsc"]) + p["bsc"]
    else:
        sc = x
    return jnp.transpose(y2 + sc, (0, 3, 1, 2))


# ------------------------------- demo ----------------------------------------

if __name__ == "__main__":
    N, Cin, Cout, H, Wd = 2, 4, 8, 16, 16
    key = jax.random.PRNGKey(0)
    kx, kp, kp2 = jax.random.split(key, 3)

    x_nchw = jax.random.normal(kx, (N, Cin, H, Wd), jnp.float32)  # PyTorch NCHW
    params = make_params(kp, Cin, Cout)
    ref = resblock_reference(x_nchw, params)

    # Default (bf16 MXU operands, f32 accumulation) -> bf16-level tolerance.
    out = jax.block_until_ready(resblock_pallas(x_nchw, params))
    assert out.shape == (N, Cout, H, Wd)
    np.testing.assert_allclose(np.asarray(out), np.asarray(ref),
                               rtol=2e-2, atol=2e-2)

    # Exactness check of the restructured math with f32 MXU operands.
    out_f32 = jax.block_until_ready(
        resblock_pallas(x_nchw, params, mm_dtype=jnp.float32))
    np.testing.assert_allclose(np.asarray(out_f32), np.asarray(ref),
                               rtol=1e-3, atol=1e-3)

    # Cin == Cout exercises the identity-shortcut (VPU add, no 1x1 matmul) path.
    params_id = make_params(kp2, Cin, Cin)
    out_id = jax.block_until_ready(resblock_pallas(x_nchw, params_id))
    ref_id = resblock_reference(x_nchw, params_id)
    np.testing.assert_allclose(np.asarray(out_id), np.asarray(ref_id),
                               rtol=2e-2, atol=2e-2)

    print("KERNEL_OK")
</pallas_src>

<mosaic_0001>
module attributes {stable_mosaic.version = 11 : i64} {
  func.func @kernel(%arg0: i32, %arg1: memref<32x64xf32, #tpu.memory_space<vmem>>, %arg2: memref<1x64xf32, #tpu.memory_space<vmem>>, %arg3: memref<1x64xf32, #tpu.memory_space<vmem>>, %arg4: memref<192x64xbf16, #tpu.memory_space<vmem>>, %arg5: memref<1x64xf32, #tpu.memory_space<vmem>>, %arg6: memref<256x128xbf16, #tpu.memory_space<vmem>>, %arg7: memref<1x128xf32, #tpu.memory_space<vmem>>, %arg8: memref<32x128xf32, #tpu.memory_space<vmem>>, %arg9: memref<48x64xf32, #tpu.memory_space<vmem>>, %arg10: memref<32x256xf32, #tpu.memory_space<vmem>>) attributes {dimension_semantics = [#tpu.dimension_semantics<parallel>], iteration_bounds = array<i64: 1>, scalar_prefetch = 0 : i64, scratch_operands = 2 : i64, tpu.core_type = #tpu.core_type<tc>, window_params = [{transform_indices = @transform_0, window_bounds = array<i64: 32, 64>}, {pipeline_mode = #tpu.pipeline_mode<synchronous>, transform_indices = @transform_1, window_bounds = array<i64: 1, 64>}, {pipeline_mode = #tpu.pipeline_mode<synchronous>, transform_indices = @transform_2, window_bounds = array<i64: 1, 64>}, {pipeline_mode = #tpu.pipeline_mode<synchronous>, transform_indices = @transform_3, window_bounds = array<i64: 192, 64>}, {pipeline_mode = #tpu.pipeline_mode<synchronous>, transform_indices = @transform_4, window_bounds = array<i64: 1, 64>}, {pipeline_mode = #tpu.pipeline_mode<synchronous>, transform_indices = @transform_5, window_bounds = array<i64: 256, 128>}, {pipeline_mode = #tpu.pipeline_mode<synchronous>, transform_indices = @transform_6, window_bounds = array<i64: 1, 128>}, {transform_indices = @transform_7, window_bounds = array<i64: 32, 128>}]} {
    %c0 = arith.constant 0 : index
    %c0_0 = arith.constant 0 : index
    %0 = vector.load %arg1[%c0, %c0_0] : memref<32x64xf32, #tpu.memory_space<vmem>>, vector<32x64xf32>
    %1 = tpu.iota {dimensions = array<i32: 0>} : vector<32x64xi32>
    %c16_i32 = arith.constant 16 : i32
    %c0_i32 = arith.constant 0 : i32
    %2 = arith.cmpi eq, %c16_i32, %c0_i32 : i32
    %c1_i32 = arith.constant 1 : i32
    %3 = arith.select %2, %c1_i32, %c16_i32 : i32
    %4 = vector.broadcast %3 : i32 to vector<32x64xi32>
    %5 = arith.remsi %1, %4 : vector<32x64xi32>
    %c0_i32_1 = arith.constant 0 : i32
    %6 = vector.broadcast %c0_i32_1 : i32 to vector<32x64xi32>
    %7 = arith.cmpi ne, %5, %6 : vector<32x64xi32>
    %c0_i32_2 = arith.constant 0 : i32
    %8 = vector.broadcast %c0_i32_2 : i32 to vector<32x64xi32>
    %9 = arith.cmpi slt, %5, %8 : vector<32x64xi32>
    %c0_i32_3 = arith.constant 0 : i32
    %10 = arith.cmpi slt, %3, %c0_i32_3 : i32
    %11 = vector.broadcast %10 : i1 to vector<32x64xi1>
    %12 = vector.broadcast %11 : vector<32x64xi1> to vector<32x64xi1>
    %13 = arith.xori %9, %12 : vector<32x64xi1>
    %14 = arith.andi %13, %7 : vector<32x64xi1>
    %15 = vector.broadcast %3 : i32 to vector<32x64xi32>
    %16 = arith.addi %5, %15 : vector<32x64xi32>
    %17 = arith.select %14, %16, %5 : vector<32x64xi1>, vector<32x64xi32>
    %c0_i32_4 = arith.constant 0 : i32
    %18 = vector.broadcast %c0_i32_4 : i32 to vector<32x64xi32>
    %19 = arith.cmpi eq, %17, %18 : vector<32x64xi32>
    %c15_i32 = arith.constant 15 : i32
    %20 = vector.broadcast %c15_i32 : i32 to vector<32x64xi32>
    %21 = arith.cmpi eq, %17, %20 : vector<32x64xi32>
    %cst = arith.constant 0.000000e+00 : f32
    %22 = vector.broadcast %cst : f32 to vector<1x64xf32>
    %c7 = arith.constant 7 : index
    %c0_5 = arith.constant 0 : index
    %23 = vector.load %arg9[%c7, %c0_5] : memref<48x64xf32, #tpu.memory_space<vmem>>, vector<1x64xf32>
    tpu.vector_store %arg9[%c7, %c0_5], %22 {strides = array<i32>} : memref<48x64xf32, #tpu.memory_space<vmem>>, vector<1x64xf32>,
    %c40 = arith.constant 40 : index
    %c0_6 = arith.constant 0 : index
    %24 = vector.load %arg9[%c40, %c0_6] : memref<48x64xf32, #tpu.memory_space<vmem>>, vector<1x64xf32>
    tpu.vector_store %arg9[%c40, %c0_6], %22 {strides = array<i32>} : memref<48x64xf32, #tpu.memory_space<vmem>>, vector<1x64xf32>,
    %c0_7 = arith.constant 0 : index
    %c192 = arith.constant 192 : index
    %25 = vector.load %arg10[%c0_7, %c192] : memref<32x256xf32, #tpu.memory_space<vmem>>, vector<32x64xf32>
    tpu.vector_store %arg10[%c0_7, %c192], %0 {strides = array<i32>} : memref<32x256xf32, #tpu.memory_space<vmem>>, vector<32x64xf32>,
    %c0_8 = arith.constant 0 : index
    %c0_9 = arith.constant 0 : index
    %26 = vector.load %arg2[%c0_8, %c0_9] : memref<1x64xf32, #tpu.memory_space<vmem>>, vector<1x64xf32>
    %27 = vector.broadcast %26 : vector<1x64xf32> to vector<32x64xf32>
    %28 = arith.mulf %0, %27 : vector<32x64xf32>
    %c0_10 = arith.constant 0 : index
    %c0_11 = arith.constant 0 : index
    %29 = vector.load %arg3[%c0_10, %c0_11] : memref<1x64xf32, #tpu.memory_space<vmem>>, vector<1x64xf32>
    %30 = vector.broadcast %29 : vector<1x64xf32> to vector<32x64xf32>
    %31 = arith.addf %28, %30 : vector<32x64xf32>
    %cst_12 = arith.constant 0.000000e+00 : f32
    %32 = vector.broadcast %cst_12 : f32 to vector<32x64xf32>
    %33 = arith.maximumf %31, %32 : vector<32x64xf32>
    %c8 = arith.constant 8 : index
    %c0_13 = arith.constant 0 : index
    %34 = vector.load %arg9[%c8, %c0_13] : memref<48x64xf32, #tpu.memory_space<vmem>>, vector<32x64xf32>
    tpu.vector_store %arg9[%c8, %c0_13], %33 {strides = array<i32>} : memref<48x64xf32, #tpu.memory_space<vmem>>, vector<32x64xf32>,
    %c7_14 = arith.constant 7 : index
    %c0_15 = arith.constant 0 : index
    %35 = vector.load %arg9[%c7_14, %c0_15] : memref<48x64xf32, #tpu.memory_space<vmem>>, vector<32x64xf32>
    %cst_16 = arith.constant 0.000000e+00 : f32
    %36 = vector.broadcast %cst_16 : f32 to vector<32x64xf32>
    %37 = arith.select %19, %36, %35 : vector<32x64xi1>, vector<32x64xf32>
    %c9 = arith.constant 9 : index
    %c0_17 = arith.constant 0 : index
    %38 = vector.load %arg9[%c9, %c0_17] : memref<48x64xf32, #tpu.memory_space<vmem>>, vector<32x64xf32>
    %cst_18 = arith.constant 0.000000e+00 : f32
    %39 = vector.broadcast %cst_18 : f32 to vector<32x64xf32>
    %40 = arith.select %21, %39, %38 : vector<32x64xi1>, vector<32x64xf32>
    %c0_19 = arith.constant 0 : index
    %c0_20 = arith.constant 0 : index
    %41 = vector.load %arg10[%c0_19, %c0_20] : memref<32x256xf32, #tpu.memory_space<vmem>>, vector<32x64xf32>
    tpu.vector_store %arg10[%c0_19, %c0_20], %37 {strides = array<i32>} : memref<32x256xf32, #tpu.memory_space<vmem>>, vector<32x64xf32>,
    %c0_21 = arith.constant 0 : index
    %c64 = arith.constant 64 : index
    %42 = vector.load %arg10[%c0_21, %c64] : memref<32x256xf32, #tpu.memory_space<vmem>>, vector<32x64xf32>
    tpu.vector_store %arg10[%c0_21, %c64], %33 {strides = array<i32>} : memref<32x256xf32, #tpu.memory_space<vmem>>, vector<32x64xf32>,
    %c0_22 = arith.constant 0 : index
    %c128 = arith.constant 128 : index
    %43 = vector.load %arg10[%c0_22, %c128] : memref<32x256xf32, #tpu.memory_space<vmem>>, vector<32x64xf32>
    tpu.vector_store %arg10[%c0_22, %c128], %40 {strides = array<i32>} : memref<32x256xf32, #tpu.memory_space<vmem>>, vector<32x64xf32>,
    %c0_23 = arith.constant 0 : index
    %c0_24 = arith.constant 0 : index
    %44 = vector.load %arg10[%c0_23, %c0_24] : memref<32x256xf32, #tpu.memory_space<vmem>>, vector<32x192xf32>
    %45 = arith.truncf %44 : vector<32x192xf32> to vector<32x192xbf16>
    %c0_25 = arith.constant 0 : index
    %c0_26 = arith.constant 0 : index
    %46 = vector.load %arg4[%c0_25, %c0_26] : memref<192x64xbf16, #tpu.memory_space<vmem>>, vector<192x64xbf16>
    %cst_27 = arith.constant dense<0.000000e+00> : vector<32x64xf32>
    %47 = tpu.matmul %45, %46, %cst_27 {dimension_numbers = #tpu.dot_dimension_numbers<[1], [0], [0], [1], [0, 0, 1, 1], [], []>} : vector<32x192xbf16>, vector<192x64xbf16>, vector<32x64xf32> -> vector<32x64xf32>
    %c0_28 = arith.constant 0 : index
    %c0_29 = arith.constant 0 : index
    %48 = vector.load %arg5[%c0_28, %c0_29] : memref<1x64xf32, #tpu.memory_space<vmem>>, vector<1x64xf32>
    %49 = vector.broadcast %48 : vector<1x64xf32> to vector<32x64xf32>
    %50 = arith.addf %47, %49 : vector<32x64xf32>
    %cst_30 = arith.constant 0.000000e+00 : f32
    %51 = vector.broadcast %cst_30 : f32 to vector<32x64xf32>
    %52 = arith.maximumf %50, %51 : vector<32x64xf32>
    %c8_31 = arith.constant 8 : index
    %c0_32 = arith.constant 0 : index
    %53 = vector.load %arg9[%c8_31, %c0_32] : memref<48x64xf32, #tpu.memory_space<vmem>>, vector<32x64xf32>
    tpu.vector_store %arg9[%c8_31, %c0_32], %52 {strides = array<i32>} : memref<48x64xf32, #tpu.memory_space<vmem>>, vector<32x64xf32>,
    %c7_33 = arith.constant 7 : index
    %c0_34 = arith.constant 0 : index
    %54 = vector.load %arg9[%c7_33, %c0_34] : memref<48x64xf32, #tpu.memory_space<vmem>>, vector<32x64xf32>
    %cst_35 = arith.constant 0.000000e+00 : f32
    %55 = vector.broadcast %cst_35 : f32 to vector<32x64xf32>
    %56 = arith.select %19, %55, %54 : vector<32x64xi1>, vector<32x64xf32>
    %c9_36 = arith.constant 9 : index
    %c0_37 = arith.constant 0 : index
    %57 = vector.load %arg9[%c9_36, %c0_37] : memref<48x64xf32, #tpu.memory_space<vmem>>, vector<32x64xf32>
    %cst_38 = arith.constant 0.000000e+00 : f32
    %58 = vector.broadcast %cst_38 : f32 to vector<32x64xf32>
    %59 = arith.select %21, %58, %57 : vector<32x64xi1>, vector<32x64xf32>
    %c0_39 = arith.constant 0 : index
    %c0_40 = arith.constant 0 : index
    %60 = vector.load %arg10[%c0_39, %c0_40] : memref<32x256xf32, #tpu.memory_space<vmem>>, vector<32x64xf32>
    tpu.vector_store %arg10[%c0_39, %c0_40], %56 {strides = array<i32>} : memref<32x256xf32, #tpu.memory_space<vmem>>, vector<32x64xf32>,
    %c0_41 = arith.constant 0 : index
    %c64_42 = arith.constant 64 : index
    %61 = vector.load %arg10[%c0_41, %c64_42] : memref<32x256xf32, #tpu.memory_space<vmem>>, vector<32x64xf32>
    tpu.vector_store %arg10[%c0_41, %c64_42], %52 {strides = array<i32>} : memref<32x256xf32, #tpu.memory_space<vmem>>, vector<32x64xf32>,
    %c0_43 = arith.constant 0 : index
    %c128_44 = arith.constant 128 : index
    %62 = vector.load %arg10[%c0_43, %c128_44] : memref<32x256xf32, #tpu.memory_space<vmem>>, vector<32x64xf32>
    tpu.vector_store %arg10[%c0_43, %c128_44], %59 {strides = array<i32>} : memref<32x256xf32, #tpu.memory_space<vmem>>, vector<32x64xf32>,
    %c0_45 = arith.constant 0 : index
    %c0_46 = arith.constant 0 : index
    %63 = vector.load %arg10[%c0_45, %c0_46] : memref<32x256xf32, #tpu.memory_space<vmem>>, vector<32x256xf32>
    %64 = arith.truncf %63 : vector<32x256xf32> to vector<32x256xbf16>
    %c0_47 = arith.constant 0 : index
    %c0_48 = arith.constant 0 : index
    %65 = vector.load %arg6[%c0_47, %c0_48] : memref<256x128xbf16, #tpu.memory_space<vmem>>, vector<256x128xbf16>
    %cst_49 = arith.constant dense<0.000000e+00> : vector<32x128xf32>
    %66 = tpu.matmul %64, %65, %cst_49 {dimension_numbers = #tpu.dot_dimension_numbers<[1], [0], [0], [1], [0, 0, 1, 1], [], []>} : vector<32x256xbf16>, vector<256x128xbf16>, vector<32x128xf32> -> vector<32x128xf32>
    %c0_50 = arith.constant 0 : index
    %c0_51 = arith.constant 0 : index
    %67 = vector.load %arg7[%c0_50, %c0_51] : memref<1x128xf32, #tpu.memory_space<vmem>>, vector<1x128xf32>
    %68 = vector.broadcast %67 : vector<1x128xf32> to vector<32x128xf32>
    %69 = arith.addf %66, %68 : vector<32x128xf32>
    %c0_52 = arith.constant 0 : index
    %c0_53 = arith.constant 0 : index
    %70 = vector.load %arg8[%c0_52, %c0_53] : memref<32x128xf32, #tpu.memory_space<vmem>>, vector<32x128xf32>
    tpu.vector_store %arg8[%c0_52, %c0_53], %69 {strides = array<i32>} : memref<32x128xf32, #tpu.memory_space<vmem>>, vector<32x128xf32>,
    return
  }
  func.func @transform_0(%arg0: i32) -> (i32, i32) {
    %c0_i32 = arith.constant 0 : i32
    %c0_i32_0 = arith.constant 0 : i32
    return %arg0, %c0_i32 : i32, i32
  }
  func.func @transform_1(%arg0: i32) -> (i32, i32) {
    %c0_i32 = arith.constant 0 : i32
    %c0_i32_0 = arith.constant 0 : i32
    %c0_i32_1 = arith.constant 0 : i32
    return %c0_i32, %c0_i32_0 : i32, i32
  }
  func.func @transform_2(%arg0: i32) -> (i32, i32) {
    %c0_i32 = arith.constant 0 : i32
    %c0_i32_0 = arith.constant 0 : i32
    %c0_i32_1 = arith.constant 0 : i32
    return %c0_i32, %c0_i32_0 : i32, i32
  }
  func.func @transform_3(%arg0: i32) -> (i32, i32) {
    %c0_i32 = arith.constant 0 : i32
    %c0_i32_0 = arith.constant 0 : i32
    %c0_i32_1 = arith.constant 0 : i32
    return %c0_i32, %c0_i32_0 : i32, i32
  }
  func.func @transform_4(%arg0: i32) -> (i32, i32) {
    %c0_i32 = arith.constant 0 : i32
    %c0_i32_0 = arith.constant 0 : i32
    %c0_i32_1 = arith.constant 0 : i32
    return %c0_i32, %c0_i32_0 : i32, i32
  }
  func.func @transform_5(%arg0: i32) -> (i32, i32) {
    %c0_i32 = arith.constant 0 : i32
    %c0_i32_0 = arith.constant 0 : i32
    %c0_i32_1 = arith.constant 0 : i32
    return %c0_i32, %c0_i32_0 : i32, i32
  }
  func.func @transform_6(%arg0: i32) -> (i32, i32) {
    %c0_i32 = arith.constant 0 : i32
    %c0_i32_0 = arith.constant 0 : i32
    %c0_i32_1 = arith.constant 0 : i32
    return %c0_i32, %c0_i32_0 : i32, i32
  }
  func.func @transform_7(%arg0: i32) -> (i32, i32) {
    %c0_i32 = arith.constant 0 : i32
    %c0_i32_0 = arith.constant 0 : i32
    return %arg0, %c0_i32 : i32, i32
  }
}

</mosaic_0001>

<bundles_post_ra>
// kernel: tpu_custom_call.1
= control target key start
LH: loop header
LB: loop body
LE: loop exit
PB: predicated region body
PF: predicated region fallthrough
CT: control target
= control target key end

     0   :  { %s748_s30 = smov 64   ;;  %v32_v7 = vlaneseq  ;;  %v749_v11 = vmov 0   ;;  %vm143_vm0 = vcmask 523264   ;;  %vm93_vm1 = vcmask 516096   ;;  %s1005_s0 = inlined_call_operand.vmem [shape: f32[32,64], index: 0, kind: input, shape index: {}]   ;;  %s1006_s1 = inlined_call_operand.vmem [shape: f32[1,64], index: 1, kind: input, shape index: {}]   ;;  %s1007_s2 = inlined_call_operand.vmem [shape: f32[1,64], index: 2, kind: input, shape index: {}]   ;;  %s1008_s3 = inlined_call_operand.vmem [shape: bf16[192,64], index: 3, kind: input, shape index: {}]   ;;  %s1009_s4 = inlined_call_operand.vmem [shape: f32[1,64], index: 4, kind: input, shape index: {}]   ;;  %s1010_s5 = inlined_call_operand.vmem [shape: bf16[256,128], index: 5, kind: input, shape index: {}]   ;;  %s1011_s6 = inlined_call_operand.vmem [shape: f32[1,128], index: 6, kind: input, shape index: {}]   ;;  %s1012_s7 = inlined_call_operand.hbm [shape: f32[32,128], index: 7, kind: output, shape index: {}]  }
   0x1   :  { %v28_v0 = vld [vmem:[%s1005_s0] sm:$0xff]  ;;  %v29_v4 = vld [vmem:[%s1005_s0 + $0x8] sm:$0xff]  ;;  %v30_v5 = vld [vmem:[%s1005_s0 + $0x10] sm:$0xff]  ;;  %313 = vmatprep.subr.bf16.mxu0 %v749_v11  ;;  %v750_v24 = vmov 0.0  }
   0x2   :  { %v630_v1 = vld [vmem:[%s1006_s1] ss:$0 sm:$0xff]  ;;  %100 = vrot.lane.b32.xlu0 %v28_v0, %s748_s30  ;;  %v31_v6 = vld [vmem:[%s1005_s0 + $0x18] sm:$0xff]  ;;  %v699_v17 = vld [vmem:[%s1008_s3 + $0x30] sm:$0xff]   ;;  %v822_v19 = vshrl.u32 %v32_v7, 7 }
   0x3   :  { %v631_v2 = vld [vmem:[%s1007_s2] ss:$0 sm:$0xff]  ;;  %v124_v3 = vmul.f32 %v630_v1, %v28_v0  ;;  %v125_v8 = vmul.f32 %v630_v1, %v29_v4  ;;  %v126_v9 = vmul.f32 %v630_v1, %v30_v5  ;;  %v127_v10 = vmul.f32 %v630_v1, %v31_v6  ;;  %v698_v12 = vld [vmem:[%s1008_s3 + $0x38] sm:$0xff]   ;;  %v700_v23 = vld [vmem:[%s1008_s3 + $0x28] sm:$0xff]   ;;  %94 = vst.msk [vmem:[#allocation2 + $0x7] sm:$0x1] %vm93_vm1, %v750_v24 }
   0x4   :  { %314 = vmatpush1.bf16.msra.mxu0 %v698_v12  ;;  %95 = vst.msk [vmem:[#allocation2 + $0x28] sm:$0x1] %vm93_vm1, %v750_v24  ;;  %v41_v25 = vand.u32 15, %v822_v19  ;;  %v701_v26 = vld [vmem:[%s1008_s3 + $0x20] sm:$0xff]   ;;  %v35_v27 = vadd.s32 16, %v822_v19  ;;  %v702_v30 = vld [vmem:[%s1008_s3 + $0x18] sm:$0xff]  }
   0x5   :  { %v135_v13 = vadd.f32 %v631_v2, %v124_v3  ;;  %v136_v14 = vadd.f32 %v631_v2, %v125_v8  ;;  %v137_v15 = vadd.f32 %v631_v2, %v126_v9  ;;  %v138_v16 = vadd.f32 %v631_v2, %v127_v10  ;;  %315 = vmatprep.subr.bf16.mxu0 %v749_v11  ;;  %v703_v37 = vld [vmem:[%s1008_s3 + $0x10] sm:$0xff]   ;;  %v704_v39 = vld [vmem:[%s1008_s3 + $0x8] sm:$0xff]   ;;  %v705_v40 = vld [vmem:[%s1008_s3] sm:$0xff]  }
   0x6   :  { %102 = vrot.lane.b32.xlu0 %v29_v4, %s748_s30  ;;  %vm843_vm2 = vcmp.eq.s32.totalorder %v41_v25, 0  ;;  %v55_v31 = vand.u32 15, %v35_v27 }
   0x7   :  { %v139_v18 = vmax.f32 %v135_v13, 0.0  ;;  %v140_v20 = vmax.f32 %v136_v14, 0.0  ;;  %v141_v21 = vmax.f32 %v137_v15, 0.0  ;;  %v142_v22 = vmax.f32 %v138_v16, 0.0 }
   0x8   :  { %316 = vmatpush1.bf16.msra.mxu0 %v699_v17  ;;  %vm855_vm3 = vcmp.eq.s32.totalorder %v55_v31, 0 }
   0x9   :  { %172 = vrot.lane.b32.xlu1 %v139_v18, %s748_s30  ;;  %144 = vst.msk [vmem:[#allocation2 + $0x8] sm:$0xff] %vm143_vm0, %v139_v18  ;;  %145 = vst.msk [vmem:[#allocation2 + $0x10] sm:$0xff] %vm143_vm0, %v140_v20  ;;  %317 = vmatprep.subr.bf16.mxu0 %v749_v11 }
   0xa   :  { %146 = vst.msk [vmem:[#allocation2 + $0x18] sm:$0xff] %vm143_vm0, %v141_v21  ;;  %147 = vst.msk [vmem:[#allocation2 + $0x20] sm:$0xff] %vm143_vm0, %v142_v22  ;;  %104 = vrot.lane.b32.xlu0 %v30_v5, %s748_s30 }
   0xc   :  { %318 = vmatpush1.bf16.msra.mxu0 %v700_v23 }
   0xd   :  { %174 = vrot.lane.b32.xlu1 %v140_v20, %s748_s30  ;;  %319 = vmatprep.subr.bf16.mxu0 %v749_v11 }
   0xe   :  { %176 = vrot.lane.b32.xlu0 %v141_v21, %s748_s30 }
  0x10   :  { %v149_v29 = vld [vmem:[#allocation2 + $0xf] sm:$0xff]  ;;  %320 = vmatpush1.bf16.msra.mxu0 %v701_v26  ;;  %v148_v34 = vld [vmem:[#allocation2 + $0x7] sm:$0xff] }
  0x11   :  { %106 = vrot.lane.b32.xlu1 %v31_v6, %s748_s30  ;;  %165 = vst.msk [vmem:[#allocation3 + $0x10] sm:$0xff] %vm143_vm0, %v149_v29  ;;  %v150_v32 = vld [vmem:[#allocation2 + $0x17] sm:$0xff]  ;;  %v151_v33 = vld [vmem:[#allocation2 + $0x1f] sm:$0xff]  ;;  %321 = vmatprep.subr.bf16.mxu0 %v749_v11  ;;  %v152_v35 = vsel %vm843_vm2, 0.0, %v148_v34 }
  0x12   :  { %167 = vst.msk [vmem:[#allocation3 + $0x30] sm:$0xff] %vm143_vm0, %v151_v33  ;;  %164 = vst.msk [vmem:[#allocation3] sm:$0xff] %vm143_vm0, %v152_v35  ;;  %v154_v38 = vsel %vm855_vm3, 0.0, %v150_v32 }
  0x13   :  { %166 = vst.msk [vmem:[#allocation3 + $0x20] sm:$0xff] %vm143_vm0, %v154_v38 }
  0x14   :  { %322 = vmatpush1.bf16.msra.mxu0 %v702_v30 }
  0x15   :  { %178 = vrot.lane.b32.xlu1 %v142_v22, %s748_s30  ;;  %323 = vmatprep.subr.bf16.mxu0 %v749_v11 }
  0x18   :  { %324 = vmatpush1.bf16.msra.mxu0 %v703_v37 }
  0x19   :  { %325 = vmatprep.subr.bf16.mxu0 %v749_v11 }
  0x1c   :  { %326 = vmatpush1.bf16.msra.mxu0 %v704_v39 }
  0x1d   :  { %327 = vmatprep.subr.bf16.mxu0 %v749_v11 }
  0x1e   :  { %12 = vsyncpa [#allocation5], 0  ;;  %v706_v41 = vld [vmem:[%s1008_s3 + $0x58] sm:$0xff]   ;;  %v707_v42 = vld [vmem:[%s1008_s3 + $0x50] sm:$0xff]   ;;  %v34_v45 = vadd.s32 8, %v822_v19  ;;  %vm112_vm4 = vcmask 1048064  }
  0x1f   :  { %v708_v43 = vld [vmem:[%s1008_s3 + $0x48] sm:$0xff]   ;;  %v709_v44 = vld [vmem:[%s1008_s3 + $0x40] sm:$0xff]   ;;  %v157_v50 = vld [vmem:[#allocation2 + $0x11] sm:$0xff]  ;;  %v36_v51 = vadd.s32 24, %v822_v19 }
  0x20   :  { %328 = vmatpush1.bf16.msra.mxu0 %v705_v40  ;;  %v48_v46 = vand.u32 15, %v34_v45  ;;  %v156_v47 = vld [vmem:[#allocation2 + $0x9] sm:$0xff]  ;;  %v158_v56 = vld [vmem:[#allocation2 + $0x19] sm:$0xff]  ;;  %v159_v60 = vld [vmem:[#allocation2 + $0x21] sm:$0xff] }
  0x21   :  { %337 = vmatprep.subr.bf16.mxu0 %v749_v11  ;;  %v62_v55 = vand.u32 15, %v36_v51  ;;  %v710_v13 = vld [vmem:[%s1010_s5 + $0x78] sm:$0xff]   ;;  %v712_v15 = vld [vmem:[%s1010_s5 + $0x70] sm:$0xff]   ;;  %v714_v17 = vld [vmem:[%s1010_s5 + $0x68] sm:$0xff]  }
  0x22   :  { %vm893_vm5 = vcmp.eq.s32.totalorder %v48_v46, 15  ;;  %v711_v14 = vld [vmem:[%s1010_s5 + $0x38] sm:$0xff]   ;;  %664 = vmatprep.subr.bf16.mxu1 %v710_v13  ;;  %v713_v16 = vld [vmem:[%s1010_s5 + $0x30] sm:$0xff]   ;;  %v715_v18 = vld [vmem:[%s1010_s5 + $0x28] sm:$0xff]  }
  0x23   :  { %v161_v52 = vsel %vm893_vm5, 0.0, %v157_v50  ;;  %vm907_vm6 = vcmp.eq.s32.totalorder %v62_v55, 15  ;;  %665 = vmatpush3.bf16.msra.mxu1 %v711_v14  ;;  %v716_v19 = vld [vmem:[%s1010_s5 + $0x60] sm:$0xff]   ;;  %v718_v21 = vld [vmem:[%s1010_s5 + $0x58] sm:$0xff]   ;;  %v720_v23 = vld [vmem:[%s1010_s5 + $0x50] sm:$0xff]  }
  0x24   :  { %338 = vmatpush2.bf16.msra.mxu0 %v706_v41  ;;  %v163_v63 = vsel %vm907_vm6, 0.0, %v159_v60  ;;  %666 = vmatprep.subr.bf16.mxu1 %v712_v15  ;;  %v717_v20 = vld [vmem:[%s1010_s5 + $0x20] sm:$0xff]   ;;  %v719_v22 = vld [vmem:[%s1010_s5 + $0x18] sm:$0xff]   ;;  %v721_v24 = vld [vmem:[%s1010_s5 + $0x10] sm:$0xff]  }
  0x25   :  { %339 = vmatprep.subr.bf16.mxu0 %v749_v11  ;;  %v722_v25 = vld [vmem:[%s1010_s5 + $0x48] sm:$0xff]   ;;  %v632_v27 = vld [vmem:[%s1009_s4] ss:$0 sm:$0xff] }
  0x26   :  { %v723_v26 = vld [vmem:[%s1010_s5 + $0x8] sm:$0xff]   ;;  %v724_v30 = vld [vmem:[%s1010_s5 + $0x40] sm:$0xff]  }
  0x27   :  { %667 = vmatpush3.bf16.msra.mxu1 %v713_v16  ;;  %v725_v31 = vld [vmem:[%s1010_s5] sm:$0xff]  }
  0x28   :  { %340 = vmatpush2.bf16.msra.mxu0 %v707_v42  ;;  %668 = vmatprep.subr.bf16.mxu1 %v714_v17 }
  0x29   :  { %341 = vmatprep.subr.bf16.mxu0 %v749_v11 }
  0x2b   :  { %669 = vmatpush3.bf16.msra.mxu1 %v715_v18 }
  0x2c   :  { %342 = vmatpush2.bf16.msra.mxu0 %v708_v43  ;;  %670 = vmatprep.subr.bf16.mxu1 %v716_v19 }
  0x2d   :  { %343 = vmatprep.subr.bf16.mxu0 %v749_v11 }
  0x2f   :  { %671 = vmatpush3.bf16.msra.mxu1 %v717_v20 }
  0x30   :  { %344 = vmatpush2.bf16.msra.mxu0 %v709_v44  ;;  %672 = vmatprep.subr.bf16.mxu1 %v718_v21 }
  0x33   :  { %673 = vmatpush3.bf16.msra.mxu1 %v719_v22 }
  0x34   :  { %674 = vmatprep.subr.bf16.mxu1 %v720_v23 }
  0x37   :  { %675 = vmatpush3.bf16.msra.mxu1 %v721_v24 }
  0x38   :  { %676 = vmatprep.subr.bf16.mxu1 %v722_v25 }
  0x3b   :  { %677 = vmatpush3.bf16.msra.mxu1 %v723_v26 }
  0x3c   :  { %678 = vmatprep.subr.bf16.mxu1 %v724_v30 }
  0x3f   :  { %679 = vmatpush3.bf16.msra.mxu1 %v725_v31 }
  0x74   :  { %v101_v48 = vpop.permute.xlu0 %100 }
  0x75   :  { %113 = vst.msk [vmem:[#allocation3 + $0x8] sm:$0xff] %vm112_vm4, %v101_v48 }
  0x76   :  { %188 = vst.msk [vmem:[#allocation3 + $0x8] sm:$0xff] %vm143_vm0, %v156_v47 }
  0x78   :  { %v103_v53 = vpop.permute.xlu0 %102 }
  0x79   :  { %114 = vst.msk [vmem:[#allocation3 + $0x18] sm:$0xff] %vm112_vm4, %v103_v53 }
  0x7a   :  { %189 = vst.msk [vmem:[#allocation3 + $0x18] sm:$0xff] %vm143_vm0, %v161_v52 }
  0x7b   :  { %v173_v54 = vpop.permute.xlu1 %172 }
  0x7c   :  { %184 = vst.msk [vmem:[#allocation3] sm:$0xff] %vm112_vm4, %v173_v54  ;;  %v105_v57 = vpop.permute.xlu0 %104 }
  0x7d   :  { %115 = vst.msk [vmem:[#allocation3 + $0x28] sm:$0xff] %vm112_vm4, %v105_v57  ;;  %v193_v61 = vld [vmem:[#allocation3 + $0x8] sm:$0xff] }
  0x7e   :  { %190 = vst.msk [vmem:[#allocation3 + $0x28] sm:$0xff] %vm143_vm0, %v158_v56 }
  0x7f   :  { %v175_v58 = vpop.permute.xlu1 %174 }
  0x80   :  { %185 = vst.msk [vmem:[#allocation3 + $0x10] sm:$0xff] %vm112_vm4, %v175_v58  ;;  %v177_v62 = vpop.permute.xlu0 %176 }
  0x81   :  { %186 = vst.msk [vmem:[#allocation3 + $0x20] sm:$0xff] %vm112_vm4, %v177_v62  ;;  %v195_v0 = vld [vmem:[#allocation3 + $0x18] sm:$0xff] }
  0x82   :  { %v201_v2 = vpack.c.bf16 %v195_v0, %v193_v61 }
  0x83   :  { %v107_v1 = vpop.permute.xlu1 %106  ;;  %v192_v4 = vld [vmem:[#allocation3] sm:$0xff] }
  0x84   :  { %116 = vst.msk [vmem:[#allocation3 + $0x38] sm:$0xff] %vm112_vm4, %v107_v1  ;;  %645 = vmatprep.mubr.msk.bf16.mxu0 %vm143_vm0, %v201_v2 }
  0x85   :  { %191 = vst.msk [vmem:[#allocation3 + $0x38] sm:$0xff] %vm143_vm0, %v163_v63  ;;  %v197_v7 = vld [vmem:[#allocation3 + $0x28] sm:$0xff] }
  0x87   :  { %v179_v3 = vpop.permute.xlu1 %178  ;;  %v194_v5 = vld [vmem:[#allocation3 + $0x10] sm:$0xff] }
  0x88   :  { %187 = vst.msk [vmem:[#allocation3 + $0x30] sm:$0xff] %vm112_vm4, %v179_v3  ;;  %v200_v6 = vpack.c.bf16 %v194_v5, %v192_v4  ;;  %v196_v10 = vld [vmem:[#allocation3 + $0x20] sm:$0xff] }
  0x8a   :  { %346 = vmatmul.mubr.bf16.vlgmr.msra.gmra.mxu0 %v200_v6 }
  0x8c   :  { %v199_v8 = vld [vmem:[#allocation3 + $0x38] sm:$0xff] }
  0x8d   :  { %v203_v9 = vpack.c.bf16 %v199_v8, %v197_v7 }
  0x8f   :  { %646 = vmatprep.mubr.msk.bf16.mxu0 %vm143_vm0, %v203_v9  ;;  %v198_v11 = vld [vmem:[#allocation3 + $0x30] sm:$0xff] }
  0x90   :  { %v202_v12 = vpack.c.bf16 %v198_v11, %v196_v10  ;;  %v647_v11 = vld [vmem:[%s1011_s6] ss:$0 sm:$0xff] }
  0x92   :  { %354 = vmatmul.mubr.bf16.gmra.mxu0 %v202_v12 }
 0x14a   :  { %v347_v29 = vpop.f32.mrf.mxu0 }
 0x14b   :  { %v348_v32 = vadd.f32 %v632_v27, %v347_v29 }
 0x14c   :  { %v349_v33 = vpop.f32.mrf.mxu0 }
 0x14d   :  { %v362_v34 = vmax.f32 %v348_v32, 0.0 }
 0x14e   :  { %v350_v35 = vpop.f32.mrf.mxu0 }
 0x14f   :  { %366 = vst.msk [vmem:[#allocation2 + $0x8] sm:$0xff] %vm143_vm0, %v362_v34  ;;  %v351_v37 = vadd.f32 %v632_v27, %v350_v35  ;;  %394 = vrot.lane.b32.xlu0 %v362_v34, %s748_s30 }
 0x150   :  { %v352_v38 = vpop.f32.mrf.mxu0 }
 0x151   :  { %v363_v39 = vmax.f32 %v351_v37, 0.0 }
 0x152   :  { %v355_v40 = vpop.f32.mrf.mxu0 }
 0x153   :  { %367 = vst.msk [vmem:[#allocation2 + $0x10] sm:$0xff] %vm143_vm0, %v363_v39  ;;  %v356_v41 = vadd.f32 %v632_v27, %v355_v40  ;;  %396 = vrot.lane.b32.xlu1 %v363_v39, %s748_s30 }
 0x154   :  { %v357_v42 = vpop.f32.mrf.mxu0 }
 0x155   :  { %v364_v43 = vmax.f32 %v356_v41, 0.0 }
 0x156   :  { %v358_v44 = vpop.f32.mrf.mxu0  ;;  %v370_v45 = vld [vmem:[#allocation2 + $0x7] sm:$0xff] }
 0x157   :  { %368 = vst.msk [vmem:[#allocation2 + $0x18] sm:$0xff] %vm143_vm0, %v364_v43  ;;  %v359_v46 = vadd.f32 %v632_v27, %v358_v44  ;;  %398 = vrot.lane.b32.xlu0 %v364_v43, %s748_s30  ;;  %v374_v47 = vsel %vm843_vm2, 0.0, %v370_v45 }
 0x158   :  { %v360_v48 = vpop.f32.mrf.mxu0  ;;  %386 = vst.msk [vmem:[#allocation3] sm:$0xff] %vm143_vm0, %v374_v47 }
 0x159   :  { %v365_v50 = vmax.f32 %v359_v46, 0.0 }
 0x15a   :  { %v378_v51 = vld [vmem:[#allocation2 + $0x9] sm:$0xff] }
 0x15b   :  { %v371_v52 = vld [vmem:[#allocation2 + $0xf] sm:$0xff]  ;;  %369 = vst.msk [vmem:[#allocation2 + $0x20] sm:$0xff] %vm143_vm0, %v365_v50  ;;  %400 = vrot.lane.b32.xlu1 %v365_v50, %s748_s30  ;;  %410 = vst.msk [vmem:[#allocation3 + $0x8] sm:$0xff] %vm143_vm0, %v378_v51  ;;  %s751_s30 = smov [#allocation4]  }
 0x15c   :  { %387 = vst.msk [vmem:[#allocation3 + $0x10] sm:$0xff] %vm143_vm0, %v371_v52  ;;  %s619_s17 = sshll.u32 %s751_s30, 4  ;;  %s620_s17 = int_to_ptr.vmem [resolvable:$true] %s619_s17 }
 0x15d   :  { %s726_s6 = scalar_lea.vmem %s620_s17, 512  ;;  %p731_p1 = scmp.lt.s32.totalorder %s620_s17, %s620_s17 }
 0x15e   :  { %v379_v53 = vld [vmem:[#allocation2 + $0x11] sm:$0xff]  ;;  %p727_p0 = scmp.ne.s32.totalorder %s620_s17, %s726_s6  ;;  %p732_p2 = scmp.lt.s32.totalorder %s726_s6, %s726_s6 }
 0x15f   :  { %v372_v54 = vld [vmem:[#allocation2 + $0x17] sm:$0xff]  ;;  %v383_v28 = vsel %vm893_vm5, 0.0, %v379_v53 }
 0x160   :  { %v376_v55 = vsel %vm855_vm3, 0.0, %v372_v54  ;;  %411 = vst.msk [vmem:[#allocation3 + $0x18] sm:$0xff] %vm143_vm0, %v383_v28  ;;  %p733_p3 = por %p732_p2, %p731_p1 }
 0x161   :  { %388 = vst.msk [vmem:[#allocation3 + $0x20] sm:$0xff] %vm143_vm0, %v376_v55 }
 0x162   :  { %v373_v56 = vld [vmem:[#allocation2 + $0x1f] sm:$0xff]  ;;  %p734_p4 = pnand %p733_p3, %p727_p0 }
 0x163   :  { %v380_v57 = vld [vmem:[#allocation2 + $0x19] sm:$0xff]  ;;  %389 = vst.msk [vmem:[#allocation3 + $0x30] sm:$0xff] %vm143_vm0, %v373_v56  ;;  %v381_v58 = vld [vmem:[#allocation2 + $0x21] sm:$0xff] }
 0x164   :  { %412 = vst.msk [vmem:[#allocation3 + $0x28] sm:$0xff] %vm143_vm0, %v380_v57  ;;  %v385_v60 = vsel %vm907_vm6, 0.0, %v381_v58  ;;  %v415_v49 = vld [vmem:[#allocation3 + $0x8] sm:$0xff] }
 0x165   :  { %413 = vst.msk [vmem:[#allocation3 + $0x38] sm:$0xff] %vm143_vm0, %v385_v60 }
 0x167   :  { %v417_v61 = vld [vmem:[#allocation3 + $0x18] sm:$0xff] }
 0x168   :  { %v423_v36 = vpack.c.bf16 %v417_v61, %v415_v49 }
 0x16a   :  { %593 = vmatprep.mubr.bf16.mxu1 %v423_v36 }
 0x16b   :  { %v419_v1 = vld [vmem:[#allocation3 + $0x28] sm:$0xff] }
 0x16c   :  { %v421_v2 = vld [vmem:[#allocation3 + $0x38] sm:$0xff] }
 0x16d   :  { %v425_v6 = vpack.c.bf16 %v421_v2, %v419_v1 }
 0x1c1   :  { %v395_v62 = vpop.permute.xlu0 %394 }
 0x1c2   :  { %406 = vst.msk [vmem:[#allocation3] sm:$0xff] %vm112_vm4, %v395_v62 }
 0x1c5   :  { %v397_v63 = vpop.permute.xlu1 %396 }
 0x1c6   :  { %407 = vst.msk [vmem:[#allocation3 + $0x10] sm:$0xff] %vm112_vm4, %v397_v63 }
 0x1c9   :  { %v399_v0 = vpop.permute.xlu0 %398  ;;  %v414_v59 = vld [vmem:[#allocation3] sm:$0xff] }
 0x1ca   :  { %408 = vst.msk [vmem:[#allocation3 + $0x20] sm:$0xff] %vm112_vm4, %v399_v0 }
 0x1cd   :  { %v401_v3 = vpop.permute.xlu1 %400  ;;  %v416_v4 = vld [vmem:[#allocation3 + $0x10] sm:$0xff] }
 0x1ce   :  { %409 = vst.msk [vmem:[#allocation3 + $0x30] sm:$0xff] %vm112_vm4, %v401_v3  ;;  %v422_v5 = vpack.c.bf16 %v416_v4, %v414_v59 }
 0x1d0   :  { %594 = vmatmul.mubr.bf16.vlgmr.msra.gmra.mxu1 %v422_v5 }
 0x1d1   :  { %601 = vmatprep.mubr.bf16.mxu1 %v425_v6  ;;  %v418_v7 = vld [vmem:[#allocation3 + $0x20] sm:$0xff] }
 0x1d5   :  { %v420_v8 = vld [vmem:[#allocation3 + $0x30] sm:$0xff] }
 0x1d6   :  { %v424_v9 = vpack.c.bf16 %v420_v8, %v418_v7 }
 0x1d8   :  { %602 = vmatmul.mubr.bf16.gmra.mxu1 %v424_v9 }
 0x290   :  { %v680_v10 = vpop.f32.mrf.mxu1 }
 0x292   :  { %v681_v12 = vpop.f32.mrf.mxu1 }
 0x293   :  { %v682_v13 = vadd.f32 %v681_v12, %v680_v10 }
 0x294   :  { %v683_v14 = vpop.f32.mrf.mxu1 }
 0x295   :  { %v596_v15 = vadd.f32 %v682_v13, %v647_v11 }
 0x296   :  { %v684_v16 = vpop.f32.mrf.mxu1 }
 0x297   :  { %610 = vst [vmem:[#allocation4] sm:$0xff] %v596_v15  ;;  %v685_v17 = vadd.f32 %v684_v16, %v683_v14 }
 0x298   :  { %v686_v18 = vpop.f32.mrf.mxu1 }
 0x299   :  { %v599_v19 = vadd.f32 %v685_v17, %v647_v11 }
 0x29a   :  { %v687_v20 = vpop.f32.mrf.mxu1 }
 0x29b   :  { %611 = vst [vmem:[#allocation4 + $0x8] sm:$0xff] %v599_v19  ;;  %v688_v21 = vadd.f32 %v687_v20, %v686_v18 }
 0x29c   :  { %v689_v22 = vpop.f32.mrf.mxu1 }
 0x29d   :  { %v604_v23 = vadd.f32 %v688_v21, %v647_v11 }
 0x29e   :  { %v690_v24 = vpop.f32.mrf.mxu1 }
 0x29f   :  { %612 = vst [vmem:[#allocation4 + $0x10] sm:$0xff] %v604_v23  ;;  %v691_v25 = vadd.f32 %v690_v24, %v689_v22 }
 0x2a1   :  { %v607_v26 = vadd.f32 %v691_v25, %v647_v11 }
 0x2a3   :  { %613 = vst [vmem:[#allocation4 + $0x18] sm:$0xff] %v607_v26 }
 0x2a4   :  { %737 = shalt.err (!%p734_p4)
}
 0x2a5   :  { %s752_s18 = smov 128   ;;  %s753_s19 = smov 8  }
 0x2a6   :  { %625 = dma.vmem_to_hbm [thread:$0]  %s620_s17, 512, %s1012_s7, [#allocation5], %s752_s18, %s752_s18, %s753_s19  }
 0x2a7   :  { %746 = dma.done.wait [#allocation5], 512  }
 0x2a8   :  { %747 = vsyncadd [#allocation5], 4294966784 }
 0x2a9   :  { %629 = vsyncpa [#allocation5], 1 }

</bundles_post_ra>
